<compile_context>
chip_gen: v5e
topology: v5e:2x2
jax: 0.10.0
libtpu: 0.0.40
codegen_flags: <defaults>
</compile_context>

<pallas_src>
import functools
import math

import jax
import jax.numpy as jnp
import numpy as np
from jax import lax
from jax.experimental import pallas as pl
from jax.experimental.pallas import tpu as pltpu


# MXU operand dtype (bf16-native on v5e/v6e/v7x; accumulation stays f32).
# Set to jnp.float32 for bit-tight comparison against the f32 reference.
_MXU_DTYPE = jnp.bfloat16

_VMEM_LIMIT = 64 * 1024 * 1024  # raise v5e's 16 MiB scoped default; fits v7x physical


# ------------------------------ tiling helpers ------------------------------ #
def _pick_tile(dim, cap):
    """Largest tile <= cap that divides `dim` (multiple of 128), else whole dim."""
    if dim <= cap:
        return dim
    for t in (cap, 512, 256, 128):
        if t <= cap and t % 128 == 0 and dim % t == 0:
            return t
    return dim


def _heads_per_block(num_heads, head_dim, embed_dim):
    """Heads per attention grid step: lane width multiple of 128 (<=512) if possible."""
    for hb in range(num_heads, 0, -1):
        if num_heads % hb:
            continue
        w = hb * head_dim
        if w <= 512 and (w % 128 == 0 or w == embed_dim):
            return hb
    return num_heads


# ------------------------- tiled linear (x @ W + b) ------------------------- #
def _matmul_bias_kernel(x_ref, w_ref, b_ref, o_ref, acc_ref):
    # x_ref: (1, tm, tk)   w_ref: (1, tk, tn)   b_ref: (1, 1, tn)   o_ref: (1, tm, tn)
    kk = pl.program_id(3)

    @pl.when(kk == 0)
    def _init():
        acc_ref[...] = jnp.zeros_like(acc_ref)

    acc_ref[...] += jnp.dot(
        x_ref[0].astype(_MXU_DTYPE),
        w_ref[0].astype(_MXU_DTYPE),
        preferred_element_type=jnp.float32,
    )

    @pl.when(kk == pl.num_programs(3) - 1)
    def _finalize():
        o_ref[0] = (acc_ref[...] + b_ref[0]).astype(o_ref.dtype)


def _matmul_bias(x, wt, b, *, tm_cap=256, tn_cap=256, tk_cap=1024):
    """out[g] = x[g] @ wt[g] + b[g].  x: (G, M, K)  wt: (G, K, N)  b: (G, N)."""
    G, M, K = x.shape
    N = wt.shape[2]
    tm = _pick_tile(M, tm_cap)
    tn = _pick_tile(N, tn_cap)
    tk = _pick_tile(K, tk_cap)
    grid = (G, M // tm, N // tn, K // tk)
    b3 = b.reshape(G, 1, N)
    return pl.pallas_call(
        _matmul_bias_kernel,
        out_shape=jax.ShapeDtypeStruct((G, M, N), x.dtype),
        grid=grid,
        in_specs=[
            pl.BlockSpec((1, tm, tk), lambda g, i, j, k: (g, i, k)),
            pl.BlockSpec((1, tk, tn), lambda g, i, j, k: (g, k, j)),
            pl.BlockSpec((1, 1, tn), lambda g, i, j, k: (g, 0, j)),
        ],
        out_specs=pl.BlockSpec((1, tm, tn), lambda g, i, j, k: (g, i, j)),
        scratch_shapes=[pltpu.VMEM((tm, tn), jnp.float32)],
        compiler_params=pltpu.CompilerParams(
            dimension_semantics=("parallel", "parallel", "parallel", "arbitrary"),
            vmem_limit_bytes=_VMEM_LIMIT,
        ),
    )(x, wt, b3)


def pallas_linear(x, wt, b):
    """y = x @ wt + b.  x: (B, S, K), wt: (K, N) pre-transposed (bf16), b: (N,) f32."""
    B, S, K = x.shape
    N = wt.shape[1]
    y = _matmul_bias(x.reshape(1, B * S, K), wt.reshape(1, K, N), b.reshape(1, N))
    return y.reshape(B, S, N)


def fused_qkv_linear(x, wt3, b3, *, tm_cap=256, tn_cap=256, tk_cap=1024):
    """Fused QKV projection written directly into a plane-major (3, B, S, E) buffer.

    x: (B, S, K) f32, wt3: (3, K, E) bf16 (planes = Q/K/V, Q pre-scaled), b3: (3, E) f32.
    The out_spec scatters each output tile into the right plane so Q/K/V never need
    a JAX-level slice (which would be a full HBM copy) afterwards.
    """
    B, S, K = x.shape
    M = B * S
    three, K2, E = wt3.shape
    assert three == 3 and K2 == K
    tm = _pick_tile(M, tm_cap)
    tn = _pick_tile(E, tn_cap)     # tile within one plane -> each tile maps to one of Q/K/V
    tk = _pick_tile(K, tk_cap)
    n_inner = E // tn
    grid = (1, M // tm, 3 * n_inner, K // tk)
    out = pl.pallas_call(
        _matmul_bias_kernel,
        out_shape=jax.ShapeDtypeStruct((3, M, E), x.dtype),
        grid=grid,
        in_specs=[
            pl.BlockSpec((1, tm, tk), lambda g, i, j, k: (g, i, k)),
            pl.BlockSpec((1, tk, tn), lambda g, i, j, k: (j // n_inner, k, j % n_inner)),
            pl.BlockSpec((1, 1, tn), lambda g, i, j, k: (j // n_inner, 0, j % n_inner)),
        ],
        out_specs=pl.BlockSpec((1, tm, tn), lambda g, i, j, k: (j // n_inner, i, j % n_inner)),
        scratch_shapes=[pltpu.VMEM((tm, tn), jnp.float32)],
        compiler_params=pltpu.CompilerParams(
            dimension_semantics=("parallel", "parallel", "parallel", "arbitrary"),
            vmem_limit_bytes=_VMEM_LIMIT,
        ),
    )(x.reshape(1, M, K), wt3, b3.reshape(3, 1, E))
    return out.reshape(3, B, S, E)


# ------------------------------ attention kernel ----------------------------- #
def _mha_kernel(*refs, heads_per_block, head_dim, has_mask):
    if has_mask:
        q_ref, k_ref, v_ref, mask_ref, o_ref, m_ref, l_ref, acc_ref, qc_ref = refs
    else:
        q_ref, k_ref, v_ref, o_ref, m_ref, l_ref, acc_ref, qc_ref = refs

    kv_idx = pl.program_id(3)

    @pl.when(kv_idx == 0)
    def _init():
        m_ref[...] = jnp.full_like(m_ref, -jnp.inf)
        l_ref[...] = jnp.zeros_like(l_ref)
        acc_ref[...] = jnp.zeros_like(acc_ref)
        # Q (scale already folded into the projection weights) is resident across
        # the kv axis: cast it to the MXU dtype once per q block.
        qc_ref[...] = q_ref[0].astype(qc_ref.dtype)

    if has_mask:
        # int8 mask, shared by every head in the block (masked_fill(mask == 0)).
        masked_out = mask_ref[0] == 0  # (tq, tkv)

    # TODO(synk): for Dh >= 128 models, batch the heads into one dot_general
    # (heads on a batch axis) to avoid sub-128-lane head slices and improve MXU
    # fill; the per-head loop below is kept because it lowers cleanly for any Dh.
    for h in range(heads_per_block):
        lo = h * head_dim
        hi = lo + head_dim
        q = qc_ref[:, lo:hi]                                   # (tq, Dh) bf16
        kh = k_ref[0, :, lo:hi].astype(qc_ref.dtype)           # (tkv, Dh)
        vh = v_ref[0, :, lo:hi].astype(qc_ref.dtype)           # (tkv, Dh)

        # q @ k^T without materializing a transposed K tile (MXU contracts Dh).
        s = lax.dot_general(
            q, kh, (((1,), (1,)), ((), ())), preferred_element_type=jnp.float32
        )  # (tq, tkv)
        if has_mask:
            s = jnp.where(masked_out, -1e9, s)

        # Online softmax (flash-style) across kv chunks.
        m_prev = m_ref[h]                                         # (tq, 1)
        m_new = jnp.maximum(m_prev, jnp.max(s, axis=-1, keepdims=True))
        alpha = jnp.exp(m_prev - m_new)
        # TODO(synk): on v6e/v7x a bf16 exp here would double EUP throughput
        # (not valid on v5e); kept f32 for portability/accuracy.
        p = jnp.exp(s - m_new)                                    # (tq, tkv)
        l_ref[h] = alpha * l_ref[h] + jnp.sum(p, axis=-1, keepdims=True)
        acc_ref[h] = alpha * acc_ref[h] + jnp.dot(
            p.astype(qc_ref.dtype), vh, preferred_element_type=jnp.float32
        )
        m_ref[h] = m_new

    @pl.when(kv_idx == pl.num_programs(3) - 1)
    def _finalize():
        for h in range(heads_per_block):
            lo = h * head_dim
            inv_l = pl.reciprocal(l_ref[h], approx=True)  # EUP slot, ~free
            o_ref[0, :, lo:lo + head_dim] = (acc_ref[h] * inv_l).astype(o_ref.dtype)


def _normalize_mask(mask, batch, sq, sk):
    """Return (int8 mask of shape (1 or B, Sq, Sk), has_batch_dim)."""
    m = jnp.asarray(mask)
    if m.ndim == 4:
        if m.shape[1] != 1:
            # TODO(synk): per-head (non-broadcast) masks need a head-indexed mask BlockSpec.
            raise NotImplementedError("only head-broadcast masks are supported")
        m = m[:, 0]
    if m.ndim == 2:
        m = m[None]
    if m.ndim != 3:
        raise ValueError(f"unsupported mask rank {m.ndim}")
    mb = m.shape[0]
    if mb not in (1, batch):
        raise ValueError(f"mask batch {mb} incompatible with batch {batch}")
    for d, t in zip(m.shape[1:], (sq, sk)):
        if d not in (1, t):
            raise ValueError(
                f"mask shape {tuple(m.shape)} incompatible with (Sq={sq}, Sk={sk}) "
                f"(stored K/V length mismatch?)"
            )
    has_batch = mb > 1
    m = jnp.broadcast_to(m, (batch if has_batch else 1, sq, sk))
    return (m != 0).astype(jnp.int8), has_batch


def pallas_attention(q, k, v, num_heads, head_dim, mask=None,
                     *, q_plane=0, k_plane=0, v_plane=0):
    """Scaled dot-product attention with heads packed along the last axis.

    q/k/v are plane-major buffers of shape (P, B, S, E); `*_plane` selects which
    plane holds the tensor (P=1 for standalone projections, P=3 for the fused QKV
    buffer).  The 1/sqrt(Dh) scale is assumed folded into the Q projection.
    """
    _, B, Sq, E = q.shape
    Sk = k.shape[2]
    Dh = head_dim
    assert E == num_heads * Dh

    hb = _heads_per_block(num_heads, Dh, E)
    tq = _pick_tile(Sq, 512)     # larger tq -> fewer K/V re-streams over HBM
    tkv = _pick_tile(Sk, 512)
    grid = (B, num_heads // hb, Sq // tq, Sk // tkv)

    in_specs = [
        pl.BlockSpec((None, 1, tq, hb * Dh), lambda b, g, qi, ki: (q_plane, b, qi, g)),
        pl.BlockSpec((None, 1, tkv, hb * Dh), lambda b, g, qi, ki: (k_plane, b, ki, g)),
        pl.BlockSpec((None, 1, tkv, hb * Dh), lambda b, g, qi, ki: (v_plane, b, ki, g)),
    ]
    args = [q, k, v]
    has_mask = mask is not None
    if has_mask:
        mask_i8, mask_has_batch = _normalize_mask(mask, B, Sq, Sk)
        if mask_has_batch:
            in_specs.append(pl.BlockSpec((1, tq, tkv), lambda b, g, qi, ki: (b, qi, ki)))
        else:
            in_specs.append(pl.BlockSpec((1, tq, tkv), lambda b, g, qi, ki: (0, qi, ki)))
        args.append(mask_i8)

    kernel = functools.partial(
        _mha_kernel, heads_per_block=hb, head_dim=Dh, has_mask=has_mask
    )
    return pl.pallas_call(
        kernel,
        out_shape=jax.ShapeDtypeStruct((B, Sq, E), q.dtype),
        grid=grid,
        in_specs=in_specs,
        out_specs=pl.BlockSpec((1, tq, hb * Dh), lambda b, g, qi, ki: (b, qi, g)),
        scratch_shapes=[
            pltpu.VMEM((hb, tq, 1), jnp.float32),    # running row max per head
            pltpu.VMEM((hb, tq, 1), jnp.float32),    # running softmax denom per head
            pltpu.VMEM((hb, tq, Dh), jnp.float32),   # running output accumulator
            pltpu.VMEM((tq, hb * Dh), _MXU_DTYPE),   # resident Q, cast once per q block
        ],
        compiler_params=pltpu.CompilerParams(
            dimension_semantics=("parallel", "parallel", "parallel", "arbitrary"),
            vmem_limit_bytes=_VMEM_LIMIT,
        ),
    )(*args)


# ----------------------------------- module ---------------------------------- #
class MultiHeadAttention:
    """JAX/Pallas port of the PyTorch MultiHeadAttention module."""

    def __init__(self, embed_dim, num_heads, rng_key):
        assert embed_dim % num_heads == 0
        self.embed_dim = embed_dim
        self.num_heads = num_heads
        self.head_dim = embed_dim // num_heads
        self.stored_k = None
        self.stored_v = None
        self._stored_qkv3 = None   # fused (3, B, S, E) plane-major cache

        bound = 1.0 / math.sqrt(embed_dim)
        keys = jax.random.split(rng_key, 8)

        def u(kk, shape):
            return jax.random.uniform(kk, shape, jnp.float32, -bound, bound)

        # PyTorch-layout (out, in) f32 weights (kept for the pure-JAX reference).
        self.wq, self.bq = u(keys[0], (embed_dim, embed_dim)), u(keys[1], (embed_dim,))
        self.wk, self.bk = u(keys[2], (embed_dim, embed_dim)), u(keys[3], (embed_dim,))
        self.wv, self.bv = u(keys[4], (embed_dim, embed_dim)), u(keys[5], (embed_dim,))
        self.wo, self.bo = u(keys[6], (embed_dim, embed_dim)), u(keys[7], (embed_dim,))

        # Kernel-side weights: pre-transposed (in, out), bf16, with 1/sqrt(Dh)
        # folded into the Q projection (so attention never rescales Q per kv step).
        scale = 1.0 / math.sqrt(self.head_dim)
        self.wq_t_scaled = (self.wq * scale).T.astype(_MXU_DTYPE)
        self.bq_scaled = self.bq * scale
        self.wk_t = self.wk.T.astype(_MXU_DTYPE)
        self.wv_t = self.wv.T.astype(_MXU_DTYPE)
        self.wo_t = self.wo.T.astype(_MXU_DTYPE)
        # Fused QKV weights in plane-major (3, E, E) layout for the self-attention path.
        self.w_qkv_t3 = jnp.stack(
            [(self.wq * scale).T, self.wk.T, self.wv.T]).astype(_MXU_DTYPE)
        self.b_qkv3 = jnp.stack([self.bq * scale, self.bk, self.bv])

    def _has_stored_kv(self):
        return self._stored_qkv3 is not None or (
            self.stored_k is not None and self.stored_v is not None)

    def forward(self, query, key, value, mask=None, use_stored_kv=False):
        B, _, E = query.shape
        assert E == self.embed_dim
        H = self.num_heads

        if use_stored_kv and self._has_stored_kv():
            q_arr = pallas_linear(query, self.wq_t_scaled, self.bq_scaled)[None]
            q_pl = 0
            if self._stored_qkv3 is not None:
                # K/V are planes 1/2 of the fused cache -- read in place, no slicing.
                k_arr = v_arr = self._stored_qkv3
                k_pl, v_pl = 1, 2
            else:
                k_arr, v_arr = self.stored_k[None], self.stored_v[None]
                k_pl = v_pl = 0
            if k_arr.shape[1] != B:
                raise ValueError("stored K/V cache batch size does not match query")
        elif key is query and value is query:
            # Self-attention: fused QKV projection emitted directly as (3, B, S, E);
            # attention reads Q/K/V planes in place (no HBM slicing copies).
            qkv3 = fused_qkv_linear(query, self.w_qkv_t3, self.b_qkv3)
            self._stored_qkv3, self.stored_k, self.stored_v = qkv3, None, None
            q_arr = k_arr = v_arr = qkv3
            q_pl, k_pl, v_pl = 0, 1, 2
        else:
            # Distinct q/k/v inputs: separate projections (fusing would need an
            # extra activation stack copy).
            q_arr = pallas_linear(query, self.wq_t_scaled, self.bq_scaled)[None]
            k3 = pallas_linear(key, self.wk_t, self.bk)
            v3 = pallas_linear(value, self.wv_t, self.bv)
            self._stored_qkv3, self.stored_k, self.stored_v = None, k3, v3
            k_arr, v_arr = k3[None], v3[None]
            q_pl = k_pl = v_pl = 0

        # Attention consumes/produces the (B, S, E) layout directly (heads are
        # contiguous along E).  Mask Sq/Sk (including vs. a stored K/V cache) is
        # validated inside pallas_attention -> _normalize_mask.
        ctx = pallas_attention(q_arr, k_arr, v_arr, H, self.head_dim, mask=mask,
                               q_plane=q_pl, k_plane=k_pl, v_plane=v_pl)
        return pallas_linear(ctx, self.wo_t, self.bo)

    def get_key_values(self):
        if self._stored_qkv3 is not None:
            return (self._stored_qkv3[1], self._stored_qkv3[2])
        return (self.stored_k, self.stored_v)


# ------------------------------ pure-JAX reference ---------------------------- #
def reference_mha(mha, query, key, value, mask=None):
    def lin(x, w, b):
        return x @ w.T + b

    B = query.shape[0]
    H, Dh, E = mha.num_heads, mha.head_dim, mha.embed_dim
    Q = lin(query, mha.wq, mha.bq)
    K = lin(key, mha.wk, mha.bk)
    V = lin(value, mha.wv, mha.bv)

    def to_heads(x):
        return jnp.transpose(x.reshape(B, -1, H, Dh), (0, 2, 1, 3))

    Qh, Kh, Vh = to_heads(Q), to_heads(K), to_heads(V)
    scores = jnp.einsum("bhqd,bhkd->bhqk", Qh, Kh) / jnp.sqrt(jnp.float32(Dh))
    if mask is not None:
        scores = jnp.where(mask == 0, -1e9, scores)
    attn = jax.nn.softmax(scores, axis=-1)
    out = jnp.einsum("bhqk,bhkd->bhqd", attn, Vh)
    out = jnp.transpose(out, (0, 2, 1, 3)).reshape(B, -1, E)
    return lin(out, mha.wo, mha.bo)


# ------------------------------------- main ----------------------------------- #
if __name__ == "__main__":
    B, S, E, H = 2, 8, 32, 8  # batch, seq, embed_dim, num_heads  (head_dim = 4)

    root = jax.random.PRNGKey(0)
    k_params, k_q, k_k, k_v = jax.random.split(root, 4)

    mha = MultiHeadAttention(E, H, k_params)

    query = jax.random.normal(k_q, (B, S, E), jnp.float32)
    key = jax.random.normal(k_k, (B, S, E), jnp.float32)
    value = jax.random.normal(k_v, (B, S, E), jnp.float32)

    # bf16 MXU operands / bf16 weights vs. f32 reference -> ~1e-3 class error.
    RTOL = ATOL = 2e-2

    # 1) Prefill (distinct q/k/v): computes and stores K/V.
    out = jax.block_until_ready(mha.forward(query, key, value))
    ref = reference_mha(mha, query, key, value)
    np.testing.assert_allclose(np.asarray(out), np.asarray(ref), rtol=RTOL, atol=ATOL)

    # 2) Decode-style pass reusing the stored (separate) K/V cache.
    out_cached = jax.block_until_ready(
        mha.forward(query, key, value, use_stored_kv=True)
    )
    np.testing.assert_allclose(
        np.asarray(out_cached), np.asarray(ref), rtol=RTOL, atol=ATOL
    )

    # 3) Self-attention: fused plane-major (3, B, S, E) QKV projection path.
    out_self = jax.block_until_ready(mha.forward(query, query, query))
    ref_self = reference_mha(mha, query, query, query)
    np.testing.assert_allclose(
        np.asarray(out_self), np.asarray(ref_self), rtol=RTOL, atol=ATOL
    )

    # 3b) Decode reusing the fused K/V planes in place (no slicing copies).
    out_fc = jax.block_until_ready(mha.forward(key, query, query, use_stored_kv=True))
    ref_fc = reference_mha(mha, key, query, query)
    np.testing.assert_allclose(np.asarray(out_fc), np.asarray(ref_fc), rtol=RTOL, atol=ATOL)

    # 4) Masked (causal) attention path (int8 batch-broadcast mask).
    causal = jnp.tril(jnp.ones((S, S), jnp.float32))[None, None]  # (1, 1, S, S)
    out_masked = jax.block_until_ready(mha.forward(query, key, value, mask=causal))
    ref_masked = reference_mha(mha, query, key, value, mask=causal)
    np.testing.assert_allclose(
        np.asarray(out_masked), np.asarray(ref_masked), rtol=RTOL, atol=ATOL
    )

    print("KERNEL_OK")
</pallas_src>

<mosaic_0001>
module attributes {stable_mosaic.version = 11 : i64} {
  func.func @_matmul_bias_kernel(%arg0: i32, %arg1: i32, %arg2: i32, %arg3: i32, %arg4: memref<1x16x32xf32, #tpu.memory_space<vmem>>, %arg5: memref<1x32x32xbf16, #tpu.memory_space<vmem>>, %arg6: memref<1x1x32xf32, #tpu.memory_space<vmem>>, %arg7: memref<1x16x32xf32, #tpu.memory_space<vmem>>, %arg8: memref<16x32xf32, #tpu.memory_space<vmem>>) attributes {dimension_semantics = [#tpu.dimension_semantics<parallel>, #tpu.dimension_semantics<parallel>, #tpu.dimension_semantics<parallel>, #tpu.dimension_semantics<arbitrary>], iteration_bounds = array<i64: 1, 1, 1, 1>, scalar_prefetch = 0 : i64, scratch_operands = 1 : i64, tpu.core_type = #tpu.core_type<tc>, window_params = [{transform_indices = @transform_0, window_bounds = array<i64: 1, 16, 32>}, {transform_indices = @transform_1, window_bounds = array<i64: 1, 32, 32>}, {transform_indices = @transform_2, window_bounds = array<i64: 1, 1, 32>}, {transform_indices = @transform_3, window_bounds = array<i64: 1, 16, 32>}]} {
    %c0_i32 = arith.constant 0 : i32
    %0 = arith.cmpi eq, %arg3, %c0_i32 : i32
    %1 = arith.extui %0 : i1 to i32
    %c0_i32_0 = arith.constant 0 : i32
    %2 = arith.cmpi ne, %1, %c0_i32_0 : i32
    scf.if %2 {
      %cst_12 = arith.constant 0.000000e+00 : f32
      %15 = vector.broadcast %cst_12 : f32 to vector<16x32xf32>
      %c0_13 = arith.constant 0 : index
      %c0_14 = arith.constant 0 : index
      %16 = vector.load %arg8[%c0_13, %c0_14] : memref<16x32xf32, #tpu.memory_space<vmem>>, vector<16x32xf32>
      tpu.vector_store %arg8[%c0_13, %c0_14], %15 {strides = array<i32>} : memref<16x32xf32, #tpu.memory_space<vmem>>, vector<16x32xf32>,
    } else {
    }
    %c0 = arith.constant 0 : index
    %c0_1 = arith.constant 0 : index
    %3 = vector.load %arg8[%c0, %c0_1] : memref<16x32xf32, #tpu.memory_space<vmem>>, vector<16x32xf32>
    %c0_2 = arith.constant 0 : index
    %c0_3 = arith.constant 0 : index
    %c0_4 = arith.constant 0 : index
    %4 = vector.load %arg4[%c0_2, %c0_3, %c0_4] : memref<1x16x32xf32, #tpu.memory_space<vmem>>, vector<1x16x32xf32>
    %5 = vector.shape_cast %4 : vector<1x16x32xf32> to vector<16x32xf32>
    %6 = arith.truncf %5 : vector<16x32xf32> to vector<16x32xbf16>
    %c0_5 = arith.constant 0 : index
    %c0_6 = arith.constant 0 : index
    %c0_7 = arith.constant 0 : index
    %7 = vector.load %arg5[%c0_5, %c0_6, %c0_7] : memref<1x32x32xbf16, #tpu.memory_space<vmem>>, vector<1x32x32xbf16>
    %8 = vector.shape_cast %7 : vector<1x32x32xbf16> to vector<32x32xbf16>
    %cst = arith.constant dense<0.000000e+00> : vector<16x32xf32>
    %9 = tpu.matmul %6, %8, %cst {dimension_numbers = #tpu.dot_dimension_numbers<[1], [0], [0], [1], [0, 0, 1, 1], [], []>} : vector<16x32xbf16>, vector<32x32xbf16>, vector<16x32xf32> -> vector<16x32xf32>
    %10 = arith.addf %3, %9 : vector<16x32xf32>
    %c0_8 = arith.constant 0 : index
    %c0_9 = arith.constant 0 : index
    %11 = vector.load %arg8[%c0_8, %c0_9] : memref<16x32xf32, #tpu.memory_space<vmem>>, vector<16x32xf32>
    tpu.vector_store %arg8[%c0_8, %c0_9], %10 {strides = array<i32>} : memref<16x32xf32, #tpu.memory_space<vmem>>, vector<16x32xf32>,
    %c0_i32_10 = arith.constant 0 : i32
    %12 = arith.cmpi eq, %arg3, %c0_i32_10 : i32
    %13 = arith.extui %12 : i1 to i32
    %c0_i32_11 = arith.constant 0 : i32
    %14 = arith.cmpi ne, %13, %c0_i32_11 : i32
    scf.if %14 {
      %c0_12 = arith.constant 0 : index
      %c0_13 = arith.constant 0 : index
      %15 = vector.load %arg8[%c0_12, %c0_13] : memref<16x32xf32, #tpu.memory_space<vmem>>, vector<16x32xf32>
      %c0_14 = arith.constant 0 : index
      %c0_15 = arith.constant 0 : index
      %c0_16 = arith.constant 0 : index
      %16 = vector.load %arg6[%c0_14, %c0_15, %c0_16] : memref<1x1x32xf32, #tpu.memory_space<vmem>>, vector<1x1x32xf32>
      %17 = vector.shape_cast %16 : vector<1x1x32xf32> to vector<1x32xf32>
      %18 = vector.broadcast %17 : vector<1x32xf32> to vector<16x32xf32>
      %19 = arith.addf %15, %18 : vector<16x32xf32>
      %c0_17 = arith.constant 0 : index
      %c0_18 = arith.constant 0 : index
      %c0_19 = arith.constant 0 : index
      %20 = vector.load %arg7[%c0_17, %c0_18, %c0_19] : memref<1x16x32xf32, #tpu.memory_space<vmem>>, vector<1x16x32xf32>
      %21 = vector.shape_cast %20 : vector<1x16x32xf32> to vector<16x32xf32>
      %22 = vector.shape_cast %19 : vector<16x32xf32> to vector<1x16x32xf32>
      tpu.vector_store %arg7[%c0_17, %c0_18, %c0_19], %22 {strides = array<i32>} : memref<1x16x32xf32, #tpu.memory_space<vmem>>, vector<1x16x32xf32>,
    } else {
    }
    return
  }
  func.func @transform_0(%arg0: i32, %arg1: i32, %arg2: i32, %arg3: i32) -> (i32, i32, i32) {
    %c0_i32 = arith.constant 0 : i32
    return %arg0, %arg1, %arg3 : i32, i32, i32
  }
  func.func @transform_1(%arg0: i32, %arg1: i32, %arg2: i32, %arg3: i32) -> (i32, i32, i32) {
    %c0_i32 = arith.constant 0 : i32
    return %arg0, %arg3, %arg2 : i32, i32, i32
  }
  func.func @transform_2(%arg0: i32, %arg1: i32, %arg2: i32, %arg3: i32) -> (i32, i32, i32) {
    %c0_i32 = arith.constant 0 : i32
    %c0_i32_0 = arith.constant 0 : i32
    return %arg0, %c0_i32, %arg2 : i32, i32, i32
  }
  func.func @transform_3(%arg0: i32, %arg1: i32, %arg2: i32, %arg3: i32) -> (i32, i32, i32) {
    %c0_i32 = arith.constant 0 : i32
    return %arg0, %arg1, %arg2 : i32, i32, i32
  }
}

</mosaic_0001>

<bundles_post_ra>
// kernel: tpu_custom_call.1
= control target key start
LH: loop header
LB: loop body
LE: loop exit
PB: predicated region body
PF: predicated region fallthrough
CT: control target
= control target key end

     0   :  { %8 = vsyncpa [#allocation4], 0  ;;  %s282_s0 = inlined_call_operand.hbm [shape: f32[1,16,32], index: 0, kind: input, shape index: {}]   ;;  %s283_s1 = inlined_call_operand.hbm [shape: bf16[1,32,32], index: 1, kind: input, shape index: {}]   ;;  %s284_s2 = inlined_call_operand.vmem [shape: f32[1,1,32], index: 2, kind: input, shape index: {}]   ;;  %s285_s3 = inlined_call_operand.hbm [shape: f32[1,16,32], index: 3, kind: output, shape index: {}]  }
   0x1   :  { %9 = vsyncpa [#allocation7], 0 }
   0x2   :  { %10 = vsyncpa [#allocation5], 0  ;;  %s15_s14 = sshll.u32 %s282_s0, 4  ;;  %s229_s15 = smov [#allocation3]   ;;  %s16_s14 = int_to_ptr.hbm [resolvable:$true] %s15_s14 }
   0x3   :  { %s17_s16 = sshll.u32 %s229_s15, 4  ;;  %s28_s19 = sshll.u32 %s283_s1, 4  ;;  %s18_s16 = int_to_ptr.vmem [resolvable:$true] %s17_s16  ;;  %s29_s19 = int_to_ptr.hbm [resolvable:$true] %s28_s19 }
   0x4   :  { %s230_s20 = smov 128   ;;  %s231_s21 = smov 8  }
   0x5   :  { %23 = dma.hbm_to_vmem [thread:$0]  %s16_s14, 256, %s18_s16, [#allocation4], %s230_s20, %s230_s20, %s231_s21  }
   0x6   :  { %s232_s22 = smov [#allocation6]   ;;  %s233_s24 = smov 64  }
   0x7   :  { %s30_s23 = sshll.u32 %s232_s22, 4  ;;  %s234_s0 = smov 4   ;;  %s31_s23 = int_to_ptr.vmem [resolvable:$true] %s30_s23 }
   0x8   :  { %36 = dma.hbm_to_vmem [thread:$0]  %s29_s19, 256, %s31_s23, [#allocation7], %s233_s24, %s233_s24, %s234_s0  }
   0x9   :  { %223 = dma.done.wait [#allocation4], 256  }
   0xa   :  { %224 = vsyncadd [#allocation4], 4294967040 }
   0xb   :  { %225 = dma.done.wait [#allocation7], 256  }
   0xc   :  { %226 = vsyncadd [#allocation7], 4294967040  ;;  %vm52_vm0 = vcmask 261120   ;;  %v235_v0 = vmov 0.0   ;;  %v141_v1 = vld [vmem:[#allocation6 + $0x8] sm:$0xff]  ;;  %v140_v2 = vld [vmem:[#allocation6] sm:$0xff] }
   0xd   :  { %53 = vst.msk [vmem:[#allocation2] sm:$0xff] %vm52_vm0, %v235_v0  ;;  %86 = vmatpush.bf16.msra.mxu0 %v141_v1  ;;  %v57_v3 = vld [vmem:[#allocation3] sm:$0xff]  ;;  %v58_v4 = vld [vmem:[#allocation3 + $0x8] sm:$0xff]  ;;  %v150_v10 = vld [vmem:[%s284_s2] ss:$0 sm:$0xff]  ;;  %s236_s26 = smov [#allocation8]  }
   0xe   :  { %54 = vst.msk [vmem:[#allocation2 + $0x8] sm:$0xff] %vm52_vm0, %v235_v0  ;;  %v59_v5 = vpack.c.bf16 %v58_v4, %v57_v3  ;;  %s115_s27 = sshll.u32 %s236_s26, 4  ;;  %s117_s30 = sshll.u32 %s285_s3, 4  ;;  %s116_s27 = int_to_ptr.vmem [resolvable:$true] %s115_s27  ;;  %s118_s30 = int_to_ptr.hbm [resolvable:$true] %s117_s30 }
  0x11   :  { %87 = vmatpush.bf16.msra.mxu0 %v140_v2 }
  0x14   :  { %139 = vmatmul.msk.bf16.vlgmr.msra.gmra.mxu0 %vm52_vm0, %v59_v5  ;;  %v55_v6 = vld [vmem:[#allocation2] sm:$0xff] }
  0x15   :  { %v56_v9 = vld [vmem:[#allocation2 + $0x8] sm:$0xff] }
  0x91   :  { %v89_v7 = vpop.f32.mrf.mxu0 }
  0x92   :  { %v94_v8 = vadd.f32 %v89_v7, %v55_v6 }
  0x94   :  { %96 = vst.msk [vmem:[#allocation2] sm:$0xff] %vm52_vm0, %v94_v8 }
  0x99   :  { %v91_v11 = vpop.f32.mrf.mxu0 }
  0x9a   :  { %v95_v12 = vadd.f32 %v91_v11, %v56_v9 }
  0x9b   :  { %v101_v13 = vld [vmem:[#allocation2] sm:$0xff] }
  0x9c   :  { %97 = vst.msk [vmem:[#allocation2 + $0x8] sm:$0xff] %vm52_vm0, %v95_v12  ;;  %v107_v14 = vadd.f32 %v150_v10, %v101_v13 }
  0x9e   :  { %109 = vst.msk [vmem:[#allocation8] sm:$0xff] %vm52_vm0, %v107_v14 }
  0xa3   :  { %v102_v15 = vld [vmem:[#allocation2 + $0x8] sm:$0xff] }
  0xa4   :  { %v108_v16 = vadd.f32 %v150_v10, %v102_v15 }
  0xa6   :  { %110 = vst.msk [vmem:[#allocation8 + $0x8] sm:$0xff] %vm52_vm0, %v108_v16 }
  0xa7   :  { %123 = dma.vmem_to_hbm [thread:$0]  %s116_s27, 256, %s118_s30, [#allocation5], %s230_s20, %s230_s20, %s231_s21  }
  0xa8   :  { %227 = dma.done.wait [#allocation5], 256  }
  0xa9   :  { %228 = vsyncadd [#allocation5], 4294967040 }
  0xaa   :  { %128 = vsyncpa [#allocation4], 1 }
  0xab   :  { %129 = vsyncpa [#allocation7], 1 }
  0xac   :  { %130 = vsyncpa [#allocation5], 1 }

</bundles_post_ra>
